<compile_context>
chip_gen: v5e
topology: v5e:2x2
jax: 0.10.0
libtpu: 0.0.40
codegen_flags: <defaults>
</compile_context>

<pallas_src>
import numpy as np
import jax
import jax.numpy as jnp
from jax.experimental import pallas as pl
from jax.experimental.pallas import tpu as pltpu


# ------------------------------ Tiling policy ------------------------------ #
# Use the MXU whenever the channel contraction is >= 8 wide; below that the
# padded-MXU waste exceeds the tiny unrolled VPU broadcast-MAC and the kernel
# is HBM-bound either way.
_MXU_C_THRESHOLD = 8
# Target bytes for one (C, TILE) buffer.  With double-buffered in + out tiles
# plus the resident weight this stays well under the default scoped VMEM limit
# on every generation (v5e 16 MiB, v6e/v7x 32 MiB) without vmem_limit_bytes.
_PER_BUFFER_BUDGET = 2 * 1024 * 1024
# Keep DMA chunks >= ~1 MiB so the ~0.35 us/step overhead is a small fraction
# of each step's HBM time (this was the main perf loss before).
_PER_BUFFER_FLOOR = 1 * 1024 * 1024


def _pick_tile(extent, align, granule_bytes, n_batch,
               budget_bytes=_PER_BUFFER_BUDGET, floor_bytes=_PER_BUFFER_FLOOR):
    """Pick the tile size along the streamed (spatial) axis.

    extent        : total length of the streamed axis
    align         : required tile multiple (128 lanes, or 8 sublane-slabs)
    granule_bytes : VMEM bytes of one `align`-sized granule of a (C, tile) buffer
    n_batch       : batch grid extent (for the v7x parallelism cap)
    """
    if extent <= align:
        return extent                         # one full-extent block (always legal)
    n_gran = pl.cdiv(extent, align)
    g_budget = max(1, budget_bytes // granule_bytes)                 # VMEM cap
    g_floor = max(1, min(g_budget, floor_bytes // granule_bytes))    # amortize step cost
    # Aim for >= ~8 total grid steps (keeps both v7x TCs fed, pipeline overlaps),
    # but never at the price of sub-1 MiB DMA chunks.
    steps_per_batch = max(1, pl.cdiv(8, n_batch))
    g_par = max(1, pl.cdiv(n_gran, steps_per_batch))
    g = max(g_floor, min(g_budget, g_par))
    g = min(g, n_gran)
    tile = g * align
    if tile >= extent:
        return extent                         # full-extent block, no masked boundary
    return tile                               # multiple of `align`; last block masked


# ----------------------------- Pallas kernels ------------------------------ #
def _make_vpu_kernel(c):
    """Small-C path: unrolled broadcast-MAC on the VPU.

    x_ref/o_ref: (c, S, 128) sublane-dense slabs (preferred) or (c, T)
    lane-dense fallback.  w_ref: (c, c) in SMEM -> cheap scalar reads,
    vreg-scalar multiply-accumulate, hidden under the HBM stream.
    """
    def kernel(x_ref, w_ref, o_ref):
        x = x_ref[...].astype(jnp.float32)
        for co in range(c):
            acc = w_ref[co, 0] * x[0:1]
            for k in range(1, c):
                acc = acc + w_ref[co, k] * x[k:k + 1]
            o_ref[co:co + 1] = acc.astype(o_ref.dtype)
    return kernel


def _mxu_kernel(x_ref, w_ref, o_ref):
    """C >= 8 path: (C, C) @ (C, T) on the MXU in f32 (no bf16 downcast).

    Arithmetic intensity is ~C/4 flop/byte (far below the MXU/HBM crossover),
    so narrower operands buy nothing and would break forward/log-det
    consistency of the invertible flow.
    """
    o_ref[...] = jnp.dot(
        w_ref[...], x_ref[...],
        preferred_element_type=jnp.float32,
        precision=jax.lax.Precision.HIGHEST,
    ).astype(o_ref.dtype)


def invertible_1x1_pallas(x_nchw, weight, *, mxu_c_threshold=_MXU_C_THRESHOLD):
    """y[n,c,h,w] = sum_k W[c,k] * x[n,k,h,w]  (invertible 1x1 conv, no bias).

    Returns (y, log_det) with log_det[n] = H*W * log|det(W)|.
    """
    n, c, h, w = x_nchw.shape
    hw = h * w
    itemsize = jnp.dtype(x_nchw.dtype).itemsize

    use_mxu = c >= mxu_c_threshold
    use_slab_layout = (not use_mxu) and (hw % 128 == 0)

    cost = pl.CostEstimate(
        flops=2 * c * c * n * hw,
        transcendentals=0,
        bytes_accessed=2 * n * c * hw * itemsize
        + c * c * jnp.dtype(weight.dtype).itemsize,
    )
    cparams = pltpu.CompilerParams(dimension_semantics=("parallel", "parallel"))

    if use_slab_layout:
        # Sublane-dense layout: x viewed as (N, C, HW//128, 128) (free reshape).
        # Every (S, 128) slab fills vregs completely even for C < 8, and output
        # stores are full-tile unmasked `vst`.
        n_slabs = hw // 128
        s = _pick_tile(n_slabs, 8, c * 8 * 128 * itemsize, n)
        grid = (n, pl.cdiv(n_slabs, s))
        x_in = x_nchw.reshape(n, c, n_slabs, 128)
        y = pl.pallas_call(
            _make_vpu_kernel(c),
            out_shape=jax.ShapeDtypeStruct((n, c, n_slabs, 128), x_nchw.dtype),
            grid_spec=pl.GridSpec(
                grid=grid,
                in_specs=[
                    pl.BlockSpec((None, c, s, 128), lambda b, j: (b, 0, j, 0)),
                    # Whole (C, C) weight resident in SMEM (scalar reads).
                    pl.BlockSpec(memory_space=pltpu.MemorySpace.SMEM),
                ],
                out_specs=pl.BlockSpec((None, c, s, 128), lambda b, j: (b, 0, j, 0)),
            ),
            compiler_params=cparams,
            cost_estimate=cost,
        )(x_in, weight.astype(jnp.float32))
        y = y.reshape(n, c, h, w)
    else:
        # Lane-dense (C, T) layout: used by the MXU path, and as a fallback for
        # small C when HW is not a multiple of 128 (boundary handled by Pallas
        # masking -- no pad / no output slice, no extra HBM passes).
        t = _pick_tile(hw, 128, c * 128 * itemsize, n)
        grid = (n, pl.cdiv(hw, t))
        x_in = x_nchw.reshape(n, c, hw)
        if use_mxu:
            kernel = _mxu_kernel
            w_arg = weight
            w_spec = pl.BlockSpec((c, c), lambda b, j: (0, 0))   # resident in VMEM
        else:
            kernel = _make_vpu_kernel(c)
            w_arg = weight.astype(jnp.float32)
            w_spec = pl.BlockSpec(memory_space=pltpu.MemorySpace.SMEM)
        y = pl.pallas_call(
            kernel,
            out_shape=jax.ShapeDtypeStruct((n, c, hw), x_nchw.dtype),
            grid_spec=pl.GridSpec(
                grid=grid,
                in_specs=[
                    pl.BlockSpec((None, c, t), lambda b, j: (b, 0, j)),
                    w_spec,
                ],
                out_specs=pl.BlockSpec((None, c, t), lambda b, j: (b, 0, j)),
            ),
            compiler_params=cparams,
            cost_estimate=cost,
        )(x_in, w_arg)
        y = y.reshape(n, c, h, w)

    # log|det dJ| per sample = H*W * log|det(W)|  (tiny CxC scalar glue, f32).
    _, logabsdet = jnp.linalg.slogdet(weight.astype(jnp.float32))
    log_det = jnp.full((n,), hw * logabsdet, dtype=jnp.float32)
    return y, log_det


# ----------------------- AbstractNode port (graph glue) -------------------- #
class AbstractNode:
    """JAX port of invertible/graph.py::AbstractNode forward-path semantics."""

    def __init__(self, prev, module, notify_prev_nodes=True,
                 remove_prev_node_next=False, **tags):
        self.next = []
        self.change_prev(prev, notify_prev_nodes, remove_prev_node_next)
        self.module = module
        self.cur_out = None
        self.cur_out_log_det = None
        self.cur_in = None
        self.cur_in_log_det = None
        self.tags = tags

    def change_prev(self, prev, notify_prev_nodes, remove_prev_node_next):
        if remove_prev_node_next:
            assert notify_prev_nodes
        if prev is not None and not hasattr(prev, "__len__"):
            prev = [prev]
        self.prev = prev
        if self.prev is not None:
            for p in self.prev:
                if remove_prev_node_next:
                    p.next = []
                if notify_prev_nodes:
                    p.register_next(self)

    def register_next(self, next_module):
        self.next.append(next_module)

    def forward(self, x, fixed=None):
        assert self.cur_out is None, "Please remove cur out before forward"
        try:
            out, log_det = self._forward(x, fixed=fixed)
        finally:
            self.remove_cur_in()
            self.remove_cur_out()
        return out, log_det

    def _forward(self, x, fixed=None):
        if self.cur_out is None:
            if self.prev is not None:
                xs, prev_log_dets = list(
                    zip(*[p._forward(x, fixed=fixed) for p in self.prev])
                )
                if hasattr(self, "condition_nodes"):
                    for cnode in self.condition_nodes:
                        _ = cnode._forward(x, fixed=fixed)
            else:
                xs = [x]
                prev_log_dets = [0]
            y, logdet = self._forward_myself(prev_log_dets, *xs, fixed=fixed)
            self.cur_out = y
            self.cur_out_log_det = logdet
        return self.cur_out, self.cur_out_log_det

    def remove_cur_out(self):
        if self.prev is not None:
            for p in self.prev:
                p.remove_cur_out()
        if hasattr(self, "condition_nodes"):
            for cnode in self.condition_nodes:
                cnode.remove_cur_out()
                cnode.remove_cur_in()
        self.cur_out = None
        self.cur_out_log_det = None

    def remove_cur_in(self):
        if self.prev is not None:
            for p in self.prev:
                p.remove_cur_in()
        if hasattr(self, "condition_nodes"):
            for cnode in self.condition_nodes:
                cnode.remove_cur_out()
                cnode.remove_cur_in()
        self.cur_in = None
        self.cur_in_log_det = None

    def remove_cur_in_out(self):
        self.remove_cur_in()
        self.remove_cur_out()

    # TODO(synk): _invert / _invert_myself / find_starting_node (inverse pass)
    # not ported; forward only.
    def _forward_myself(self, prev_log_dets, *xs, fixed=None):
        raise NotImplementedError


class Node(AbstractNode):
    """Concrete node: applies the wrapped module, accumulates log-dets."""

    def _forward_myself(self, prev_log_dets, *xs, fixed=None):
        (x,) = xs
        y, log_det = self.module(x)
        total = log_det
        for pld in prev_log_dets:
            total = total + pld
        return y, total


class Invertible1x1Module:
    """Invertible channel-mixing module backed by the Pallas kernel."""

    def __init__(self, weight):
        self.weight = weight

    def __call__(self, x):
        return invertible_1x1_pallas(x, self.weight)


# --------------------------------- main ------------------------------------ #
if __name__ == "__main__":
    key = jax.random.PRNGKey(0)

    def run_case(n, c, h, w, tol):
        kx, kw = jax.random.split(jax.random.fold_in(key, c * 10000 + h * 100 + w))
        x = jax.random.normal(kx, (n, c, h, w), dtype=jnp.float32)
        # Deterministic, well-conditioned invertible weight: I + small perturbation.
        weight = (jnp.eye(c, dtype=jnp.float32)
                  + 0.1 * jax.random.normal(kw, (c, c), dtype=jnp.float32))

        node = Node(prev=None, module=Invertible1x1Module(weight))
        out, log_det = node.forward(x)
        out = jax.block_until_ready(out)
        log_det = jax.block_until_ready(log_det)

        # Exact float64 numpy reference for output and log-det.
        x64 = np.asarray(x, np.float64)
        w64 = np.asarray(weight, np.float64)
        ref = np.einsum("ck,nkhw->nchw", w64, x64)
        ref_ld = np.full((n,), h * w * np.linalg.slogdet(w64)[1])

        assert out.shape == (n, c, h, w)
        np.testing.assert_allclose(np.asarray(out), ref, rtol=tol, atol=tol)
        np.testing.assert_allclose(np.asarray(log_det), ref_ld, rtol=1e-4, atol=1e-3)

    # Small-C sublane-dense VPU path (the primary demo shape).
    run_case(2, 4, 16, 16, tol=1e-5)
    # MXU path (C >= 8), f32 matmul on the MXU.
    run_case(2, 8, 16, 16, tol=1e-4)
    # Lane-dense small-C fallback (HW not a multiple of 128, masked boundary-free).
    run_case(2, 4, 10, 12, tol=1e-5)

    print("KERNEL_OK")
</pallas_src>

<mosaic_0001>
module attributes {stable_mosaic.version = 11 : i64} {
  func.func @kernel(%arg0: i32, %arg1: i32, %arg2: memref<1x4x2x128xf32, #tpu.memory_space<vmem>>, %arg3: memref<4x4xf32, #tpu.memory_space<smem>>, %arg4: memref<1x4x2x128xf32, #tpu.memory_space<vmem>>) attributes {dimension_semantics = [#tpu.dimension_semantics<parallel>, #tpu.dimension_semantics<parallel>], iteration_bounds = array<i64: 2, 1>, scalar_prefetch = 0 : i64, scratch_operands = 0 : i64, tpu.core_type = #tpu.core_type<tc>, window_params = [{transform_indices = @transform_0, window_bounds = array<i64: 1, 4, 2, 128>}, {transform_indices = @transform_1, window_bounds = array<i64: 4, 4>}, {transform_indices = @transform_2, window_bounds = array<i64: 1, 4, 2, 128>}]} {
    %c0 = arith.constant 0 : index
    %c0_0 = arith.constant 0 : index
    %c0_1 = arith.constant 0 : index
    %c0_2 = arith.constant 0 : index
    %0 = vector.load %arg2[%c0, %c0_0, %c0_1, %c0_2] : memref<1x4x2x128xf32, #tpu.memory_space<vmem>>, vector<1x4x2x128xf32>
    %1 = vector.shape_cast %0 : vector<1x4x2x128xf32> to vector<4x2x128xf32>
    %c0_3 = arith.constant 0 : index
    %c0_4 = arith.constant 0 : index
    %2 = memref.load %arg3[%c0_3, %c0_4] : memref<4x4xf32, #tpu.memory_space<smem>>
    %3 = vector.extract_strided_slice %1 {offsets = [0, 0, 0], sizes = [1, 2, 128], strides = [1, 1, 1]} : vector<4x2x128xf32> to vector<1x2x128xf32>
    %4 = vector.broadcast %2 : f32 to vector<1x2x128xf32>
    %5 = arith.mulf %4, %3 : vector<1x2x128xf32>
    %c0_5 = arith.constant 0 : index
    %c1 = arith.constant 1 : index
    %6 = memref.load %arg3[%c0_5, %c1] : memref<4x4xf32, #tpu.memory_space<smem>>
    %7 = vector.extract_strided_slice %1 {offsets = [1, 0, 0], sizes = [1, 2, 128], strides = [1, 1, 1]} : vector<4x2x128xf32> to vector<1x2x128xf32>
    %8 = vector.broadcast %6 : f32 to vector<1x2x128xf32>
    %9 = arith.mulf %8, %7 : vector<1x2x128xf32>
    %10 = arith.addf %5, %9 : vector<1x2x128xf32>
    %c0_6 = arith.constant 0 : index
    %c2 = arith.constant 2 : index
    %11 = memref.load %arg3[%c0_6, %c2] : memref<4x4xf32, #tpu.memory_space<smem>>
    %12 = vector.extract_strided_slice %1 {offsets = [2, 0, 0], sizes = [1, 2, 128], strides = [1, 1, 1]} : vector<4x2x128xf32> to vector<1x2x128xf32>
    %13 = vector.broadcast %11 : f32 to vector<1x2x128xf32>
    %14 = arith.mulf %13, %12 : vector<1x2x128xf32>
    %15 = arith.addf %10, %14 : vector<1x2x128xf32>
    %c0_7 = arith.constant 0 : index
    %c3 = arith.constant 3 : index
    %16 = memref.load %arg3[%c0_7, %c3] : memref<4x4xf32, #tpu.memory_space<smem>>
    %17 = vector.extract_strided_slice %1 {offsets = [3, 0, 0], sizes = [1, 2, 128], strides = [1, 1, 1]} : vector<4x2x128xf32> to vector<1x2x128xf32>
    %18 = vector.broadcast %16 : f32 to vector<1x2x128xf32>
    %19 = arith.mulf %18, %17 : vector<1x2x128xf32>
    %20 = arith.addf %15, %19 : vector<1x2x128xf32>
    %c0_8 = arith.constant 0 : index
    %c0_9 = arith.constant 0 : index
    %c0_10 = arith.constant 0 : index
    %c0_11 = arith.constant 0 : index
    %21 = vector.load %arg4[%c0_8, %c0_9, %c0_10, %c0_11] : memref<1x4x2x128xf32, #tpu.memory_space<vmem>>, vector<1x1x2x128xf32>
    %22 = vector.shape_cast %21 : vector<1x1x2x128xf32> to vector<1x2x128xf32>
    %23 = vector.shape_cast %20 : vector<1x2x128xf32> to vector<1x1x2x128xf32>
    tpu.vector_store %arg4[%c0_8, %c0_9, %c0_10, %c0_11], %23 {strides = array<i32>} : memref<1x4x2x128xf32, #tpu.memory_space<vmem>>, vector<1x1x2x128xf32>,
    %c1_12 = arith.constant 1 : index
    %c0_13 = arith.constant 0 : index
    %24 = memref.load %arg3[%c1_12, %c0_13] : memref<4x4xf32, #tpu.memory_space<smem>>
    %25 = vector.extract_strided_slice %1 {offsets = [0, 0, 0], sizes = [1, 2, 128], strides = [1, 1, 1]} : vector<4x2x128xf32> to vector<1x2x128xf32>
    %26 = vector.broadcast %24 : f32 to vector<1x2x128xf32>
    %27 = arith.mulf %26, %25 : vector<1x2x128xf32>
    %c1_14 = arith.constant 1 : index
    %c1_15 = arith.constant 1 : index
    %28 = memref.load %arg3[%c1_14, %c1_15] : memref<4x4xf32, #tpu.memory_space<smem>>
    %29 = vector.extract_strided_slice %1 {offsets = [1, 0, 0], sizes = [1, 2, 128], strides = [1, 1, 1]} : vector<4x2x128xf32> to vector<1x2x128xf32>
    %30 = vector.broadcast %28 : f32 to vector<1x2x128xf32>
    %31 = arith.mulf %30, %29 : vector<1x2x128xf32>
    %32 = arith.addf %27, %31 : vector<1x2x128xf32>
    %c1_16 = arith.constant 1 : index
    %c2_17 = arith.constant 2 : index
    %33 = memref.load %arg3[%c1_16, %c2_17] : memref<4x4xf32, #tpu.memory_space<smem>>
    %34 = vector.extract_strided_slice %1 {offsets = [2, 0, 0], sizes = [1, 2, 128], strides = [1, 1, 1]} : vector<4x2x128xf32> to vector<1x2x128xf32>
    %35 = vector.broadcast %33 : f32 to vector<1x2x128xf32>
    %36 = arith.mulf %35, %34 : vector<1x2x128xf32>
    %37 = arith.addf %32, %36 : vector<1x2x128xf32>
    %c1_18 = arith.constant 1 : index
    %c3_19 = arith.constant 3 : index
    %38 = memref.load %arg3[%c1_18, %c3_19] : memref<4x4xf32, #tpu.memory_space<smem>>
    %39 = vector.extract_strided_slice %1 {offsets = [3, 0, 0], sizes = [1, 2, 128], strides = [1, 1, 1]} : vector<4x2x128xf32> to vector<1x2x128xf32>
    %40 = vector.broadcast %38 : f32 to vector<1x2x128xf32>
    %41 = arith.mulf %40, %39 : vector<1x2x128xf32>
    %42 = arith.addf %37, %41 : vector<1x2x128xf32>
    %c0_20 = arith.constant 0 : index
    %c1_21 = arith.constant 1 : index
    %c0_22 = arith.constant 0 : index
    %c0_23 = arith.constant 0 : index
    %43 = vector.load %arg4[%c0_20, %c1_21, %c0_22, %c0_23] : memref<1x4x2x128xf32, #tpu.memory_space<vmem>>, vector<1x1x2x128xf32>
    %44 = vector.shape_cast %43 : vector<1x1x2x128xf32> to vector<1x2x128xf32>
    %45 = vector.shape_cast %42 : vector<1x2x128xf32> to vector<1x1x2x128xf32>
    tpu.vector_store %arg4[%c0_20, %c1_21, %c0_22, %c0_23], %45 {strides = array<i32>} : memref<1x4x2x128xf32, #tpu.memory_space<vmem>>, vector<1x1x2x128xf32>,
    %c2_24 = arith.constant 2 : index
    %c0_25 = arith.constant 0 : index
    %46 = memref.load %arg3[%c2_24, %c0_25] : memref<4x4xf32, #tpu.memory_space<smem>>
    %47 = vector.extract_strided_slice %1 {offsets = [0, 0, 0], sizes = [1, 2, 128], strides = [1, 1, 1]} : vector<4x2x128xf32> to vector<1x2x128xf32>
    %48 = vector.broadcast %46 : f32 to vector<1x2x128xf32>
    %49 = arith.mulf %48, %47 : vector<1x2x128xf32>
    %c2_26 = arith.constant 2 : index
    %c1_27 = arith.constant 1 : index
    %50 = memref.load %arg3[%c2_26, %c1_27] : memref<4x4xf32, #tpu.memory_space<smem>>
    %51 = vector.extract_strided_slice %1 {offsets = [1, 0, 0], sizes = [1, 2, 128], strides = [1, 1, 1]} : vector<4x2x128xf32> to vector<1x2x128xf32>
    %52 = vector.broadcast %50 : f32 to vector<1x2x128xf32>
    %53 = arith.mulf %52, %51 : vector<1x2x128xf32>
    %54 = arith.addf %49, %53 : vector<1x2x128xf32>
    %c2_28 = arith.constant 2 : index
    %c2_29 = arith.constant 2 : index
    %55 = memref.load %arg3[%c2_28, %c2_29] : memref<4x4xf32, #tpu.memory_space<smem>>
    %56 = vector.extract_strided_slice %1 {offsets = [2, 0, 0], sizes = [1, 2, 128], strides = [1, 1, 1]} : vector<4x2x128xf32> to vector<1x2x128xf32>
    %57 = vector.broadcast %55 : f32 to vector<1x2x128xf32>
    %58 = arith.mulf %57, %56 : vector<1x2x128xf32>
    %59 = arith.addf %54, %58 : vector<1x2x128xf32>
    %c2_30 = arith.constant 2 : index
    %c3_31 = arith.constant 3 : index
    %60 = memref.load %arg3[%c2_30, %c3_31] : memref<4x4xf32, #tpu.memory_space<smem>>
    %61 = vector.extract_strided_slice %1 {offsets = [3, 0, 0], sizes = [1, 2, 128], strides = [1, 1, 1]} : vector<4x2x128xf32> to vector<1x2x128xf32>
    %62 = vector.broadcast %60 : f32 to vector<1x2x128xf32>
    %63 = arith.mulf %62, %61 : vector<1x2x128xf32>
    %64 = arith.addf %59, %63 : vector<1x2x128xf32>
    %c0_32 = arith.constant 0 : index
    %c2_33 = arith.constant 2 : index
    %c0_34 = arith.constant 0 : index
    %c0_35 = arith.constant 0 : index
    %65 = vector.load %arg4[%c0_32, %c2_33, %c0_34, %c0_35] : memref<1x4x2x128xf32, #tpu.memory_space<vmem>>, vector<1x1x2x128xf32>
    %66 = vector.shape_cast %65 : vector<1x1x2x128xf32> to vector<1x2x128xf32>
    %67 = vector.shape_cast %64 : vector<1x2x128xf32> to vector<1x1x2x128xf32>
    tpu.vector_store %arg4[%c0_32, %c2_33, %c0_34, %c0_35], %67 {strides = array<i32>} : memref<1x4x2x128xf32, #tpu.memory_space<vmem>>, vector<1x1x2x128xf32>,
    %c3_36 = arith.constant 3 : index
    %c0_37 = arith.constant 0 : index
    %68 = memref.load %arg3[%c3_36, %c0_37] : memref<4x4xf32, #tpu.memory_space<smem>>
    %69 = vector.extract_strided_slice %1 {offsets = [0, 0, 0], sizes = [1, 2, 128], strides = [1, 1, 1]} : vector<4x2x128xf32> to vector<1x2x128xf32>
    %70 = vector.broadcast %68 : f32 to vector<1x2x128xf32>
    %71 = arith.mulf %70, %69 : vector<1x2x128xf32>
    %c3_38 = arith.constant 3 : index
    %c1_39 = arith.constant 1 : index
    %72 = memref.load %arg3[%c3_38, %c1_39] : memref<4x4xf32, #tpu.memory_space<smem>>
    %73 = vector.extract_strided_slice %1 {offsets = [1, 0, 0], sizes = [1, 2, 128], strides = [1, 1, 1]} : vector<4x2x128xf32> to vector<1x2x128xf32>
    %74 = vector.broadcast %72 : f32 to vector<1x2x128xf32>
    %75 = arith.mulf %74, %73 : vector<1x2x128xf32>
    %76 = arith.addf %71, %75 : vector<1x2x128xf32>
    %c3_40 = arith.constant 3 : index
    %c2_41 = arith.constant 2 : index
    %77 = memref.load %arg3[%c3_40, %c2_41] : memref<4x4xf32, #tpu.memory_space<smem>>
    %78 = vector.extract_strided_slice %1 {offsets = [2, 0, 0], sizes = [1, 2, 128], strides = [1, 1, 1]} : vector<4x2x128xf32> to vector<1x2x128xf32>
    %79 = vector.broadcast %77 : f32 to vector<1x2x128xf32>
    %80 = arith.mulf %79, %78 : vector<1x2x128xf32>
    %81 = arith.addf %76, %80 : vector<1x2x128xf32>
    %c3_42 = arith.constant 3 : index
    %c3_43 = arith.constant 3 : index
    %82 = memref.load %arg3[%c3_42, %c3_43] : memref<4x4xf32, #tpu.memory_space<smem>>
    %83 = vector.extract_strided_slice %1 {offsets = [3, 0, 0], sizes = [1, 2, 128], strides = [1, 1, 1]} : vector<4x2x128xf32> to vector<1x2x128xf32>
    %84 = vector.broadcast %82 : f32 to vector<1x2x128xf32>
    %85 = arith.mulf %84, %83 : vector<1x2x128xf32>
    %86 = arith.addf %81, %85 : vector<1x2x128xf32>
    %c0_44 = arith.constant 0 : index
    %c3_45 = arith.constant 3 : index
    %c0_46 = arith.constant 0 : index
    %c0_47 = arith.constant 0 : index
    %87 = vector.load %arg4[%c0_44, %c3_45, %c0_46, %c0_47] : memref<1x4x2x128xf32, #tpu.memory_space<vmem>>, vector<1x1x2x128xf32>
    %88 = vector.shape_cast %87 : vector<1x1x2x128xf32> to vector<1x2x128xf32>
    %89 = vector.shape_cast %86 : vector<1x2x128xf32> to vector<1x1x2x128xf32>
    tpu.vector_store %arg4[%c0_44, %c3_45, %c0_46, %c0_47], %89 {strides = array<i32>} : memref<1x4x2x128xf32, #tpu.memory_space<vmem>>, vector<1x1x2x128xf32>,
    return
  }
  func.func @transform_0(%arg0: i32, %arg1: i32) -> (i32, i32, i32, i32) {
    %c0_i32 = arith.constant 0 : i32
    %c0_i32_0 = arith.constant 0 : i32
    %c0_i32_1 = arith.constant 0 : i32
    return %arg0, %c0_i32, %arg1, %c0_i32_0 : i32, i32, i32, i32
  }
  func.func @transform_1(%arg0: i32, %arg1: i32) -> (i32, i32) {
    %c0_i32 = arith.constant 0 : i32
    %c0_i32_0 = arith.constant 0 : i32
    %c0_i32_1 = arith.constant 0 : i32
    return %c0_i32, %c0_i32_0 : i32, i32
  }
  func.func @transform_2(%arg0: i32, %arg1: i32) -> (i32, i32, i32, i32) {
    %c0_i32 = arith.constant 0 : i32
    %c0_i32_0 = arith.constant 0 : i32
    %c0_i32_1 = arith.constant 0 : i32
    return %arg0, %c0_i32, %arg1, %c0_i32_0 : i32, i32, i32, i32
  }
}

</mosaic_0001>

<bundles_post_ra>
// kernel: tpu_custom_call.1
= control target key start
LH: loop header
LB: loop body
LE: loop exit
PB: predicated region body
PF: predicated region fallthrough
CT: control target
= control target key end

     0   :  { %7 = vsyncpa [#allocation3], 0  ;;  %s809_s0 = inlined_call_operand.hbm [shape: f32[2,4,2,128], index: 0, kind: input, shape index: {}]   ;;  %s810_s1 = inlined_call_operand.hbm [shape: f32[4,4], index: 1, kind: input, shape index: {}]   ;;  %s811_s2 = inlined_call_operand.hbm [shape: f32[2,4,2,128], index: 2, kind: output, shape index: {}]  }
   0x1   :  { %9 = vsyncpa [#allocation3 + $0x1], 0 }
   0x2   :  { %10 = vsyncpa [#allocation5], 0 }
   0x3   :  { %11 = vsyncpa [#allocation4], 0 }
   0x4   :  { %13 = vsyncpa [#allocation4 + $0x1], 0  ;;  %s647_s9 = smov 0   ;;  %s649_s10 = smov 0  }
   0x5   :  { %s651_s11 = smov 0   ;;  %s653_s12 = smov 0  }
   0x6   :  { %s655_s13 = smov 0   ;;  %s657_s14 = smov 0  }
   0x7 LB: > { %s380_s15 = sadd.s32 4294967295, %s625_s14   ;;  %s381_s16 = sadd.s32 4294967294, %s625_s14   ;;  %s625_s14 = sphi %s657_s14, %s19_s14   ;;  %s621_s13 = sphi %s655_s13, %s823_s13   ;;  %s617_s12 = sphi %s653_s12, %s822_s12   ;;  %s613_s11 = sphi %s651_s11, %s821_s11   ;;  %s609_s10 = sphi %s649_s10, %s820_s10   ;;  %s605_s9 = sphi %s647_s9, %s819_s9  }
   0x8   : > { %s40_s17 = sadd.s32 1, %s613_s11  ;;  %p47_p0 = scmp.ne.s32.totalorder %s613_s11, %s609_s10 }
   0x9   : > { %p48_p1 = scmp.eq.s32.totalorder %s625_s14, 0  ;;  %p53_p2 = scmp.ne.s32.totalorder %s609_s10, %s605_s9 }
   0xa   : > { %p685_p3 = scmp.eq.s32.totalorder %s380_s15, 0  ;;  %p100_p4 = scmp.eq.s32.totalorder %s380_s15, 1 }
   0xb   : > { %p689_p5 = por %p48_p1, %p47_p0  ;;  %p106_p6 = scmp.eq.s32.totalorder %s381_s16, 1 }
   0xc   : > { %p695_p7 = por %p685_p3, %p53_p2  ;;  %p699_p8 = por %p100_p4, %p47_p0 }
   0xd   : > { %p703_p9 = por %p106_p6, %p53_p2  ;;  %p382_p10 = scmp.ge.s32.totalorder %s625_s14, 1 }
   0xe   : > { %p113_p11 = scmp.lt.s32.totalorder %s625_s14, 3  ;;  %s125_s25 = sshll.u32 %s810_s1, 4  ;;  %s126_s25 = int_to_ptr.hbm [resolvable:$true] %s125_s25 }
   0xf   : > { %p384_p13 = scmp.ge.s32.totalorder %s625_s14, 2  ;;  %p438_p0 = scmp.lt.s32.totalorder %s625_s14, 2 }
  0x10   : > { %p712_p12 = pnand %p382_p10, %p113_p11  ;;  %s31_s28 = sadd.s32 1, %s621_s13 }
  0x11   : > { %p722_p2 = pnand %p438_p0, %p689_p5  ;;  %p33_p6 = scmp.ge.s32.totalorder %s31_s28, 2 }
  0x12   : > { %p425_p1 = pneg %p712_p12  ;;  %s136_s29 = sand.u32 1, %s613_s11  }
  0x13   : > { %s627_s30 = smov [#allocation6]   ;;  %s825_s28 = smov (%p33_p6, %s31_s28), 0 }
  0x14   : > { %p426_p4 = pnand %p425_p1, %p685_p3  ;;  %s385_s3 = sshll.u32 %s136_s29, 3 }
  0x15   : > { %s35_s4 = ssub.s32 %s621_s13, %s825_s28  ;;  %s415_s5 = sshll.u32 %s621_s13, 3 }
  0x16   : > { %428 = dma.hbm_to_smem (!%p426_p4), %s126_s25, 64, %s627_s30, [#allocation5]  }
  0x17   : > { %p38_p10 = scmp.eq.s32.totalorder %s35_s4, 0  ;;  %s146_s8 = scalar_lea.hbm %s809_s0, %s415_s5 }
  0x18   : > { %s140_s15 = scalar_lea.vmem [#allocation2], %s385_s3  ;;  %s147_s23 = sshll.u32 %s146_s8, 4  ;;  %s148_s23 = int_to_ptr.hbm [resolvable:$true] %s147_s23 }
  0x19   : > { %s149_s16 = sshll.u32 %s140_s15, 4  ;;  %s137_s24 = scalar_lea.sflag [#allocation3], %s136_s29  ;;  %s150_s16 = int_to_ptr.vmem [resolvable:$true] %s149_s16 }
  0x1a   : > { %s741_s19 = scalar_select %p38_p10, %s613_s11, %s40_s17  }
  0x1b   : > { %s628_s25 = smov 32   ;;  %s629_s30 = smov 2  }
  0x1c   : > { %432 = dma.hbm_to_vmem [thread:$0]  (!%p722_p2), %s148_s23, 128, %s150_s16, %s137_s24, %s628_s25, %s628_s25, %s629_s30  }
  0x1d   : > { %161 = sbr.rel (%p712_p12) target bundleno = 71 (0x47), region = 28  ;;  %s748_s4 = sand.u32 (!%p712_p12), 1, %s609_s10  }
  0x1e   : > { %s389_s17 = sshll.u32 (!%p712_p12), %s748_s4, 3  ;;  %s164_s3 = scalar_lea.sflag (!%p712_p12), [#allocation3], %s748_s4 }
  0x1f   : > { %s167_s5 = scalar_lea.vmem (!%p712_p12), [#allocation2], %s389_s17 }
  0x22   : > { %592 = dma.done.wait (%p695_p7), %s164_s3, 128  }
  0x23   : > { %594 = vsyncadd (%p695_p7), %s164_s3, 4294967168 }
  0x24   : > { %596 = dma.done.wait (%p685_p3), [#allocation5], 64  }
  0x25   : > { %598 = vsyncadd (%p685_p3), [#allocation5], 4294967232 }
  0x26   : > { %178 = sfence }
  0x27   : > { %s199_s26 = sld [smem:[#allocation6]]  ;;  %v195_v0 = vld [vmem:[%s167_s5] sm:$0x3]  ;;  %v196_v1 = vld [vmem:[%s167_s5 + $0x2] sm:$0x3] }
  0x28   : > { %s392_s27 = sld [smem:[#allocation6 + $0x1]]  ;;  %v197_v2 = vld [vmem:[%s167_s5 + $0x4] sm:$0x3]  ;;  %v198_v4 = vld [vmem:[%s167_s5 + $0x6] sm:$0x3] }
  0x29   : > { %s393_s29 = sld [smem:[#allocation6 + $0x2]] }
  0x2a   : > { %s394_s6 = sld [smem:[#allocation6 + $0x3]] }
  0x2b   : > { %s395_s7 = sld [smem:[#allocation6 + $0x80]] }
  0x2c   : > { %s396_s8 = sld [smem:[#allocation6 + $0x81]] }
  0x2d   : > { %v200_v3 = vstv %s199_s26  ;;  %s397_s15 = sld [smem:[#allocation6 + $0x82]]  ;;  %s764_s26 = scalar_lea.vmem [#allocation7], %s389_s17 }
  0x2e   : > { %v201_v5 = vmul.f32 %v200_v3, %v195_v0  ;;  %v203_v6 = vstv %s392_s27  ;;  %s398_s20 = sld [smem:[#allocation6 + $0x83]]  ;;  %s416_s27 = sshll.u32 %s617_s12, 3 }
  0x2f   : > { %v204_v7 = vmul.f32 %v203_v6, %v196_v1  ;;  %v207_v8 = vstv %s393_s29  ;;  %s400_s18 = sld [smem:[#allocation6 + $0x100]]  ;;  %s280_s12 = sshll.u32 %s764_s26, 4  ;;  %s281_s12 = int_to_ptr.vmem [resolvable:$true] %s280_s12 }
  0x30   : > { %v208_v9 = vmul.f32 %v207_v8, %v197_v2  ;;  %v211_v10 = vstv %s394_s6  ;;  %s401_s16 = sld [smem:[#allocation6 + $0x101]]  ;;  %s279_s6 = scalar_lea.hbm %s811_s2, %s416_s27 }
  0x31   : > { %v205_v11 = vadd.f32 %v204_v7, %v201_v5  ;;  %v212_v12 = vmul.f32 %v211_v10, %v198_v4  ;;  %v216_v13 = vstv %s395_s7  ;;  %s402_s23 = sld [smem:[#allocation6 + $0x102]]  ;;  %s282_s7 = sshll.u32 %s279_s6, 4  ;;  %s283_s7 = int_to_ptr.hbm [resolvable:$true] %s282_s7 }
  0x32   : > { %v217_v14 = vmul.f32 %v216_v13, %v195_v0  ;;  %v219_v15 = vstv %s396_s8  ;;  %s403_s24 = sld [smem:[#allocation6 + $0x103]]  ;;  %s267_s8 = scalar_lea.sflag [#allocation4], %s748_s4 }
  0x33   : > { %v209_v16 = vadd.f32 %v208_v9, %v205_v11  ;;  %v220_v17 = vmul.f32 %v219_v15, %v196_v1  ;;  %v223_v18 = vstv %s397_s15  ;;  %s405_s25 = sld [smem:[#allocation6 + $0x180]]  ;;  %s553_s15 = sshra.s32 %s283_s7, 4  ;;  %s554_s15 = int_to_ptr.hbm [resolvable:$true] %s553_s15 }
  0x34   : > { %v224_v19 = vmul.f32 %v223_v18, %v197_v2  ;;  %v227_v20 = vstv %s398_s20  ;;  %s406_s30 = sld [smem:[#allocation6 + $0x181]]  ;;  %s555_s20 = scalar_lea.hbm %s554_s15, 8 }
  0x35   : > { %v213_v21 = vadd.f32 %v212_v12, %v209_v16  ;;  %v221_v22 = vadd.f32 %v220_v17, %v217_v14  ;;  %v228_v23 = vmul.f32 %v227_v20, %v198_v4  ;;  %v233_v24 = vstv %s400_s18  ;;  %s407_s3 = sld [smem:[#allocation6 + $0x182]]  ;;  %p556_p3 = scmp.ne.s32.totalorder %s554_s15, %s555_s20 }
  0x36   : > { %v234_v25 = vmul.f32 %v233_v24, %v195_v0  ;;  %v236_v26 = vstv %s401_s16  ;;  %s408_s5 = sld [smem:[#allocation6 + $0x183]]  ;;  %p560_p11 = scmp.lt.s32.totalorder %s554_s15, %s811_s2 }
  0x37   : > { %214 = vst [vmem:[%s764_s26] sm:$0x3] %v213_v21  ;;  %v225_v27 = vadd.f32 %v224_v19, %v221_v22  ;;  %v237_v28 = vmul.f32 %v236_v26, %v196_v1  ;;  %v240_v29 = vstv %s402_s23  ;;  %p557_p5 = pnand %p556_p3, %p699_p8  ;;  %s559_s23 = scalar_lea.hbm %s811_s2, 16 }
  0x38   : > { %v241_v30 = vmul.f32 %v240_v29, %v197_v2  ;;  %v244_v31 = vstv %s403_s24  ;;  %p561_p12 = scmp.lt.s32.totalorder %s559_s23, %s555_s20 }
  0x39   : > { %v229_v32 = vadd.f32 %v228_v23, %v225_v27  ;;  %v238_v33 = vadd.f32 %v237_v28, %v234_v25  ;;  %v245_v34 = vmul.f32 %v244_v31, %v198_v4  ;;  %v250_v35 = vstv %s405_s25  ;;  %p558_p7 = pneg %p557_p5 }
  0x3a   : > { %v251_v36 = vmul.f32 %v250_v35, %v195_v0  ;;  %v253_v37 = vstv %s406_s30  ;;  %p562_p0 = por %p561_p12, %p560_p11 }
  0x3b   : > { %399 = vst [vmem:[%s764_s26 + $0x2] sm:$0x3] %v229_v32  ;;  %v242_v38 = vadd.f32 %v241_v30, %v238_v33  ;;  %v254_v39 = vmul.f32 %v253_v37, %v196_v1  ;;  %v257_v40 = vstv %s407_s3 }
  0x3c   : > { %v258_v41 = vmul.f32 %v257_v40, %v197_v2  ;;  %v261_v42 = vstv %s408_s5  ;;  %p563_p1 = pnand %p562_p0, %p558_p7 }
  0x3d   : > { %v246_v43 = vadd.f32 %v245_v34, %v242_v38  ;;  %v255_v44 = vadd.f32 %v254_v39, %v251_v36  ;;  %v262_v45 = vmul.f32 %v261_v42, %v198_v4 }
  0x3f   : > { %404 = vst [vmem:[%s764_s26 + $0x4] sm:$0x3] %v246_v43  ;;  %v259_v46 = vadd.f32 %v258_v41, %v255_v44 }
  0x41   : > { %v263_v47 = vadd.f32 %v262_v45, %v259_v46 }
  0x43   : > { %409 = vst [vmem:[%s764_s26 + $0x6] sm:$0x3] %v263_v47 }
  0x44   : > { %566 = shalt.err (!%p563_p1)
}
  0x45   : > { %s630_s4 = smov 32   ;;  %s631_s30 = smov 2  }
  0x46   : > { %423 = dma.vmem_to_hbm [thread:$0]  (%p699_p8), %s281_s12, 128, %s283_s7, %s267_s8, %s630_s4, %s630_s4, %s631_s30  }
  0x47 PF: > { %s297_s3 = sand.u32 1, %s605_s9   ;;  %p434_p2 = pnand %p384_p13, %p703_p9 }
  0x48   : > { %s298_s5 = scalar_lea.sflag [#allocation4], %s297_s3 }
  0x49   : > { %p435_p4 = pneg %p434_p2 }
  0x4b   : > { %600 = dma.done.wait (%p435_p4), %s298_s5, 128  }
  0x4c   : > { %602 = vsyncadd (%p435_p4), %s298_s5, 4294967168  ;;  %s19_s14 = sadd.s32 1, %s625_s14   ;;  %s819_s9 = smov %s609_s10 }
  0x4d   : > { %p16_p6 = scmp.ge.s32.totalorder %s19_s14, 4   ;;  %s820_s10 = smov %s613_s11 }
  0x4e   : > { %s821_s11 = smov %s741_s19  ;;  %s822_s12 = smov %s621_s13 }
  0x4f   : > { %s823_s13 = smov %s825_s28  ;;  %18 = sbr.rel (!%p16_p6) target bundleno = 7 (0x7), region = 81 }
  0x54   :  { %304 = vsyncpa [#allocation3], 1 }
  0x55   :  { %306 = vsyncpa [#allocation3 + $0x1], 1 }
  0x56   :  { %307 = vsyncpa [#allocation4], 1 }
  0x57   :  { %309 = vsyncpa [#allocation4 + $0x1], 1 }
  0x58   :  { %310 = vsyncpa [#allocation5], 1 }
  0x59   :  { %312 = vsyncpa [#allocation5 + $0x1], 1 }

</bundles_post_ra>
